<compile_context>
chip_gen: v6e
topology: v6e:2x2x1
jax: 0.10.0
libtpu: 0.0.40
codegen_flags: <defaults>
</compile_context>

<pallas_src>
import functools

import jax
import jax.numpy as jnp
import numpy as np
from jax.experimental import pallas as pl
from jax.experimental.pallas import tpu as pltpu


def _se_kernel(x_ref, w1t_ref, w2t_ref, o_ref, *, channels_on_lanes, use_mxu, inv_hw):
    """One grid step: TB batch elements, full channel & spatial extent.

    channels_on_lanes=False : x_ref (TB, C, HW)  -- spatial on lanes
    channels_on_lanes=True  : x_ref (TB, HW, C)  -- channels on lanes
    w1t_ref: (C, Cr) f32 (fc1 weight, transposed)
    w2t_ref: (Cr, C) f32 (fc2 weight, transposed)
    """
    x = x_ref[...]
    xf = x.astype(jnp.float32)

    # ---- squeeze: global average pool over spatial -> (TB, C), f32 acc ----
    spatial_axis = 1 if channels_on_lanes else 2
    pooled = jnp.sum(xf, axis=spatial_axis) * inv_hw                          # (TB, C)

    # ---- excitation: relu(pooled @ W1^T) @ W2^T -> sigmoid ----
    if use_mxu:
        h = jnp.maximum(
            jnp.dot(pooled, w1t_ref[...], preferred_element_type=jnp.float32), 0.0)  # (TB, Cr)
        y = jnp.dot(h, w2t_ref[...], preferred_element_type=jnp.float32)             # (TB, C)
    else:
        # Degenerate sizes (tiny C / Cr): keep it on the VPU/XLU, off the MXU.
        h = jnp.maximum(
            jnp.sum(pooled[:, :, None] * w1t_ref[...][None, :, :], axis=1), 0.0)     # (TB, Cr)
        y = jnp.sum(h[:, :, None] * w2t_ref[...][None, :, :], axis=1)                # (TB, C)
    scale = jax.nn.sigmoid(y).astype(x.dtype)                                        # (TB, C)

    # ---- channel gate; multiply + store in the input dtype ----
    if channels_on_lanes:
        o_ref[...] = x * scale[:, None, :]
    else:
        o_ref[...] = x * scale[:, :, None]


def se_layer(x, fc1_w, fc2_w, *, target_block_bytes=2 << 20):
    """SELayer forward.

    x:      [N, C, H, W]
    fc1_w:  [C//r, C]   (PyTorch nn.Linear weight, bias=False)
    fc2_w:  [C, C//r]   (PyTorch nn.Linear weight, bias=False)
    """
    N, C, H, W = x.shape
    HW = H * W
    Cr = fc1_w.shape[0]
    itemsize = jnp.dtype(x.dtype).itemsize

    # --- shape-dependent lane layout: put a 128-multiple on the lane axis ---
    if HW % 128 == 0:
        channels_on_lanes = False
    elif C % 128 == 0:
        channels_on_lanes = True
    else:
        channels_on_lanes = C >= HW  # best-effort lane utilization

    if channels_on_lanes:
        x_flat = jnp.transpose(x, (0, 2, 3, 1)).reshape(N, HW, C)   # (N, HW, C)
        block_shape_fn = lambda tb: (tb, HW, C)
    else:
        x_flat = x.reshape(N, C, HW)                                # (N, C, HW)
        block_shape_fn = lambda tb: (tb, C, HW)

    w1t = jnp.asarray(fc1_w, jnp.float32).T                         # (C, Cr)
    w2t = jnp.asarray(fc2_w, jnp.float32).T                         # (Cr, C)

    # --- batch-block size: amortize the ~0.35 us per-step overhead against
    #     HBM time; keep >= 2 grid steps so v7x's dual TensorCores share work.
    per_elem_bytes = C * HW * itemsize
    tb = max(1, target_block_bytes // per_elem_bytes)
    tb = min(tb, N)
    if N > 1:
        tb = min(tb, pl.cdiv(N, 2))
    tb = int(tb)
    grid = (pl.cdiv(N, tb),)

    use_mxu = (C >= 128) and (Cr >= 8)

    kernel = functools.partial(
        _se_kernel,
        channels_on_lanes=channels_on_lanes,
        use_mxu=use_mxu,
        inv_hw=float(1.0 / HW),
    )

    # VMEM budget: (in + out) double-buffered x blocks + (tiny) weight buffers.
    weight_bytes = int(w1t.size + w2t.size) * 4
    vmem_need = 4 * tb * per_elem_bytes + 4 * weight_bytes + (2 << 20)
    vmem_limit = int(min(max(vmem_need, 16 << 20), 48 << 20))

    cost = pl.CostEstimate(
        flops=int(3 * N * C * HW + 4 * N * C * Cr),
        transcendentals=int(N * C),
        bytes_accessed=int(2 * N * C * HW * itemsize + weight_bytes),
    )

    out_flat = pl.pallas_call(
        kernel,
        out_shape=jax.ShapeDtypeStruct(x_flat.shape, x.dtype),
        grid_spec=pltpu.PrefetchScalarGridSpec(
            num_scalar_prefetch=0,
            grid=grid,
            in_specs=[
                pl.BlockSpec(block_shape_fn(tb), lambda n: (n, 0, 0)),
                pl.BlockSpec((C, Cr), lambda n: (0, 0)),
                pl.BlockSpec((Cr, C), lambda n: (0, 0)),
            ],
            out_specs=pl.BlockSpec(block_shape_fn(tb), lambda n: (n, 0, 0)),
        ),
        compiler_params=pltpu.CompilerParams(
            dimension_semantics=("parallel",),
            vmem_limit_bytes=vmem_limit,
        ),
        cost_estimate=cost,
    )(x_flat, w1t, w2t)

    if channels_on_lanes:
        return jnp.transpose(out_flat.reshape(N, H, W, C), (0, 3, 1, 2))
    return out_flat.reshape(N, C, H, W)


def se_layer_reference(x, fc1_w, fc2_w):
    """Pure-JAX reference matching the PyTorch SELayer forward."""
    xf = x.astype(jnp.float32)
    pooled = jnp.mean(xf, axis=(2, 3))                        # [N, C]
    h = jnp.maximum(pooled @ fc1_w.T, 0.0)                    # [N, C//r]
    scale = jax.nn.sigmoid(h @ fc2_w.T)                       # [N, C]
    return (xf * scale[:, :, None, None]).astype(x.dtype)


if __name__ == "__main__":
    key = jax.random.PRNGKey(0)
    k1, k2, k3, k4, k5, k6 = jax.random.split(key, 6)
    reduction = 16

    # --- Test 1: HW multiple of 128 (spatial on lanes, VPU/XLU FC path) ---
    N, C, H, W = 2, 64, 16, 16
    Cr = C // reduction
    x = jax.random.normal(k1, (N, C, H, W), dtype=jnp.float32)
    b1 = 1.0 / np.sqrt(C)
    fc1_w = jax.random.uniform(k2, (Cr, C), jnp.float32, minval=-b1, maxval=b1)
    b2 = 1.0 / np.sqrt(Cr)
    fc2_w = jax.random.uniform(k3, (C, Cr), jnp.float32, minval=-b2, maxval=b2)

    out = jax.block_until_ready(se_layer(x, fc1_w, fc2_w))
    ref = se_layer_reference(x, fc1_w, fc2_w)
    np.testing.assert_allclose(np.asarray(out), np.asarray(ref), rtol=1e-5, atol=1e-5)

    # --- Test 2: HW = 7x7 = 49 (not 128-multiple) -> channels-on-lanes layout
    #     with C=128, Cr=8 so the MXU FC path is exercised as well. ---
    N2, C2, H2, W2 = 2, 128, 7, 7
    Cr2 = C2 // reduction
    x2 = jax.random.normal(k4, (N2, C2, H2, W2), dtype=jnp.float32)
    b1 = 1.0 / np.sqrt(C2)
    fc1_w2 = jax.random.uniform(k5, (Cr2, C2), jnp.float32, minval=-b1, maxval=b1)
    b2 = 1.0 / np.sqrt(Cr2)
    fc2_w2 = jax.random.uniform(k6, (C2, Cr2), jnp.float32, minval=-b2, maxval=b2)

    out2 = jax.block_until_ready(se_layer(x2, fc1_w2, fc2_w2))
    ref2 = se_layer_reference(x2, fc1_w2, fc2_w2)
    np.testing.assert_allclose(np.asarray(out2), np.asarray(ref2), rtol=1e-5, atol=1e-5)

    print("KERNEL_OK")
</pallas_src>

<mosaic_0001>
module attributes {stable_mosaic.version = 11 : i64} {
  func.func @_se_kernel(%arg0: i32, %arg1: memref<1x64x256xf32, #tpu.memory_space<vmem>>, %arg2: memref<64x4xf32, #tpu.memory_space<vmem>>, %arg3: memref<4x64xf32, #tpu.memory_space<vmem>>, %arg4: memref<1x64x256xf32, #tpu.memory_space<vmem>>) attributes {dimension_semantics = [#tpu.dimension_semantics<parallel>], iteration_bounds = array<i64: 2>, scalar_prefetch = 0 : i64, scratch_operands = 0 : i64, tpu.core_type = #tpu.core_type<tc>, window_params = [{transform_indices = @transform_0, window_bounds = array<i64: 1, 64, 256>}, {pipeline_mode = #tpu.pipeline_mode<synchronous>, transform_indices = @transform_1, window_bounds = array<i64: 64, 4>}, {pipeline_mode = #tpu.pipeline_mode<synchronous>, transform_indices = @transform_2, window_bounds = array<i64: 4, 64>}, {transform_indices = @transform_3, window_bounds = array<i64: 1, 64, 256>}]} {
    %c0 = arith.constant 0 : index
    %c0_0 = arith.constant 0 : index
    %c0_1 = arith.constant 0 : index
    %0 = vector.load %arg1[%c0, %c0_0, %c0_1] : memref<1x64x256xf32, #tpu.memory_space<vmem>>, vector<1x64x256xf32>
    %cst = arith.constant dense<0.000000e+00> : vector<1x64xf32>
    %1 = vector.multi_reduction <add>, %0, %cst [2] : vector<1x64x256xf32> to vector<1x64xf32>
    %cst_2 = arith.constant 3.906250e-03 : f32
    %2 = vector.broadcast %cst_2 : f32 to vector<1x64xf32>
    %3 = arith.mulf %1, %2 : vector<1x64xf32>
    %4 = vector.shape_cast %3 : vector<1x64xf32> to vector<1x64x1xf32>
    %c0_3 = arith.constant 0 : index
    %c0_4 = arith.constant 0 : index
    %5 = vector.load %arg2[%c0_3, %c0_4] : memref<64x4xf32, #tpu.memory_space<vmem>>, vector<64x4xf32>
    %6 = vector.shape_cast %5 : vector<64x4xf32> to vector<1x64x4xf32>
    %7 = vector.broadcast %4 : vector<1x64x1xf32> to vector<1x64x4xf32>
    %8 = arith.mulf %7, %6 : vector<1x64x4xf32>
    %cst_5 = arith.constant dense<0.000000e+00> : vector<1x4xf32>
    %9 = vector.multi_reduction <add>, %8, %cst_5 [1] : vector<1x64x4xf32> to vector<1x4xf32>
    %cst_6 = arith.constant 0.000000e+00 : f32
    %10 = vector.broadcast %cst_6 : f32 to vector<1x4xf32>
    %11 = arith.maximumf %9, %10 : vector<1x4xf32>
    %12 = vector.shape_cast %11 : vector<1x4xf32> to vector<1x4x1xf32>
    %c0_7 = arith.constant 0 : index
    %c0_8 = arith.constant 0 : index
    %13 = vector.load %arg3[%c0_7, %c0_8] : memref<4x64xf32, #tpu.memory_space<vmem>>, vector<4x64xf32>
    %14 = vector.shape_cast %13 : vector<4x64xf32> to vector<1x4x64xf32>
    %15 = vector.broadcast %12 : vector<1x4x1xf32> to vector<1x4x64xf32>
    %16 = arith.mulf %15, %14 : vector<1x4x64xf32>
    %cst_9 = arith.constant dense<0.000000e+00> : vector<1x64xf32>
    %17 = vector.multi_reduction <add>, %16, %cst_9 [1] : vector<1x4x64xf32> to vector<1x64xf32>
    %18 = arith.negf %17 : vector<1x64xf32>
    %19 = math.exp %18 : vector<1x64xf32>
    %cst_10 = arith.constant 1.000000e+00 : f32
    %20 = vector.broadcast %cst_10 : f32 to vector<1x64xf32>
    %21 = arith.addf %20, %19 : vector<1x64xf32>
    %22 = arith.divf %20, %21 : vector<1x64xf32>
    %23 = vector.shape_cast %22 : vector<1x64xf32> to vector<1x64x1xf32>
    %24 = vector.broadcast %23 : vector<1x64x1xf32> to vector<1x64x256xf32>
    %25 = arith.mulf %0, %24 : vector<1x64x256xf32>
    %c0_11 = arith.constant 0 : index
    %c0_12 = arith.constant 0 : index
    %c0_13 = arith.constant 0 : index
    %26 = vector.load %arg4[%c0_11, %c0_12, %c0_13] : memref<1x64x256xf32, #tpu.memory_space<vmem>>, vector<1x64x256xf32>
    tpu.vector_store %arg4[%c0_11, %c0_12, %c0_13], %25 {strides = array<i32>} : memref<1x64x256xf32, #tpu.memory_space<vmem>>, vector<1x64x256xf32>,
    return
  }
  func.func @transform_0(%arg0: i32) -> (i32, i32, i32) {
    %c0_i32 = arith.constant 0 : i32
    %c0_i32_0 = arith.constant 0 : i32
    %c0_i32_1 = arith.constant 0 : i32
    return %arg0, %c0_i32, %c0_i32_0 : i32, i32, i32
  }
  func.func @transform_1(%arg0: i32) -> (i32, i32) {
    %c0_i32 = arith.constant 0 : i32
    %c0_i32_0 = arith.constant 0 : i32
    %c0_i32_1 = arith.constant 0 : i32
    return %c0_i32, %c0_i32_0 : i32, i32
  }
  func.func @transform_2(%arg0: i32) -> (i32, i32) {
    %c0_i32 = arith.constant 0 : i32
    %c0_i32_0 = arith.constant 0 : i32
    %c0_i32_1 = arith.constant 0 : i32
    return %c0_i32, %c0_i32_0 : i32, i32
  }
  func.func @transform_3(%arg0: i32) -> (i32, i32, i32) {
    %c0_i32 = arith.constant 0 : i32
    %c0_i32_0 = arith.constant 0 : i32
    %c0_i32_1 = arith.constant 0 : i32
    return %arg0, %c0_i32, %c0_i32_0 : i32, i32, i32
  }
}

</mosaic_0001>

<bundles_post_ra>
// kernel: tpu_custom_call.1
= control target key start
LH: loop header
LB: loop body
LE: loop exit
PB: predicated region body
PF: predicated region fallthrough
CT: control target
= control target key end

     0   :  { %8 = vsyncpa [#allocation3], 0  ;;  %s912_s0 = inlined_call_operand.hbm [shape: f32[2,64,256], index: 0, kind: input, shape index: {}]   ;;  %s913_s1 = inlined_call_operand.vmem [shape: f32[64,4], index: 1, kind: input, shape index: {}]   ;;  %s914_s2 = inlined_call_operand.vmem [shape: f32[4,64], index: 2, kind: input, shape index: {}]   ;;  %s915_s3 = inlined_call_operand.hbm [shape: f32[2,64,256], index: 3, kind: output, shape index: {}]  }
   0x1   :  { %10 = vsyncpa [#allocation3 + $0x1], 0 }
   0x2   :  { %11 = vsyncpa [#allocation4], 0 }
   0x3   :  { %13 = vsyncpa [#allocation4 + $0x1], 0  ;;  %s636_s12 = smov 0   ;;  %s638_s13 = smov 0  }
   0x4   :  { %s640_s14 = smov 0   ;;  %s642_s15 = smov 0  }
   0x5 LB: > { %s657_s16 = sadd.s32 4294967295, %s608_s15   ;;  %s445_s17 = sadd.s32 4294967294, %s608_s15   ;;  %s608_s15 = sphi %s642_s15, %s930_s15   ;;  %s604_s14 = sphi %s640_s14, %s929_s14   ;;  %s600_s13 = sphi %s638_s13, %s928_s13   ;;  %s596_s12 = sphi %s636_s12, %s927_s12  }
   0x6   : > { %s661_s18 = sadd.s32 1, %s608_s15   ;;  %s26_s19 = sadd.s32 1, %s604_s14 }
   0x7   : > { %s23_s20 = ssub.s32 %s608_s15, %s661_s18  ;;  %p33_p0 = scmp.ne.s32.totalorder %s604_s14, %s600_s13 }
   0x8   : > { %p24_p1 = scmp.eq.s32.totalorder %s23_s20, 0  ;;  %p34_p2 = scmp.eq.s32.totalorder %s608_s15, 0 }
   0x9   : > { %p39_p3 = scmp.ne.s32.totalorder %s600_s13, %s596_s12  ;;  %p40_p4 = scmp.eq.s32.totalorder %s657_s16, 0 }
   0xa   : > { %s673_s21 = scalar_select %p24_p1, %s604_s14, %s26_s19  }
   0xb   : > { %p675_p5 = por %p34_p2, %p33_p0  ;;  %p679_p6 = por %p40_p4, %p39_p3 }
   0xc   : > { %p105_p7 = scmp.eq.s32.totalorder %s657_s16, 1  ;;  %p111_p8 = scmp.eq.s32.totalorder %s445_s17, 1 }
   0xd   : > { %s919_s23 = scalar_select %p679_p6, 1, 0 }
   0xe   : > { %p474_p10 = scmp.lt.s32.totalorder %s608_s15, 2  ;;  %p686_p11 = por %p105_p7, %p33_p0 }
   0xf   : > { %p690_p12 = por %p111_p8, %p39_p3  ;;  %s137_s26 = sand.u32 1, %s604_s14  }
  0x10   : > { %s920_s24 = scalar_select %p686_p11, 1, 0 }
  0x11   : > { %s921_s25 = scalar_select %p690_p12, 1, 0 }
  0x12   : > { %s460_s27 = sshll.u32 %s608_s15, 11  ;;  %s448_s28 = sshll.u32 %s137_s26, 7 }
  0x13   : > { %s699_s4 = scalar_lea.hbm %s912_s0, %s460_s27  ;;  %s141_s5 = scalar_lea.vmem [#allocation2], %s448_s28 }
  0x14   : > { %s148_s6 = sshll.u32 %s141_s5, 4  ;;  %p703_p13 = pnand %p474_p10, %p675_p5  ;;  %s707_s6 = int_to_ptr.vmem [resolvable:$true] %s148_s6 }
  0x15   : > { %s709_s8 = scalar_lea.sflag [#allocation3], %s137_s26  ;;  %s516_s9 = scalar_lea.hbm %s699_s4, 2048 }
  0x16   : > { %p517_p0 = scmp.ne.s32.totalorder %s699_s4, %s516_s9  ;;  %p518_p1 = pneg %p703_p13 }
  0x17   : > { %s521_s17 = scalar_lea.hbm %s912_s0, 4096  ;;  %p522_p4 = scmp.lt.s32.totalorder %s699_s4, %s912_s0 }
  0x18   : > { %p519_p2 = pnand %p518_p1, %p517_p0  ;;  %p523_p5 = scmp.lt.s32.totalorder %s521_s17, %s516_s9 }
  0x1a   : > { %p520_p3 = pneg %p519_p2  ;;  %p524_p7 = por %p523_p5, %p522_p4 }
  0x1c   : > { %p525_p8 = pnand %p524_p7, %p520_p3 }
  0x1e   : > { %528 = shalt.err (!%p525_p8)
}
  0x1f   : > { %s529_s22 = scalar_lea.vmem %s707_s6, 2048  ;;  %s610_s26 = smov [#allocation2]  }
  0x20   : > { %p530_p10 = scmp.ne.s32.totalorder %s707_s6, %s529_s22  ;;  %s534_s27 = sshll.u32 %s610_s26, 4  ;;  %s535_s27 = int_to_ptr.vmem [resolvable:$false] %s534_s27 }
  0x21   : > { %s536_s28 = scalar_lea.vmem %s535_s27, 4096  ;;  %p537_p2 = scmp.lt.s32.totalorder %s707_s6, %s535_s27 }
  0x22   : > { %p532_p9 = pnand %p530_p10, %p518_p1  ;;  %p538_p12 = scmp.lt.s32.totalorder %s536_s28, %s529_s22 }
  0x24   : > { %p533_p0 = pneg %p532_p9  ;;  %p539_p11 = por %p538_p12, %p537_p2 }
  0x26   : > { %p540_p6 = pnand %p539_p11, %p533_p0 }
  0x28   : > { %543 = shalt.err (!%p540_p6)
}
  0x29   : > { %s611_s29 = smov 256   ;;  %s612_s30 = smov 16  }
  0x2a   : > { %469 = dma.hbm_to_vmem [thread:$0]  (!%p703_p13), %s699_s4, 2048, %s707_s6, %s709_s8, %s611_s29, %s611_s29, %s612_s30  }
  0x2b   : > { %p451_p9 = scmp.ge.s32.totalorder %s608_s15, 1  ;;  %p156_p1 = scmp.lt.s32.totalorder %s608_s15, 3 }
  0x2d   : > { %p157_p3 = pnand %p451_p9, %p156_p1 }
  0x2e   : > { %s733_s5 = sand.u32 (!%p157_p3), 1, %s600_s13   ;;  %p923_p6 = scmp.ne.s32.totalorder (!%p157_p3), %s919_s23, 0 }
  0x2f   : > { %160 = sbr.rel (%p157_p3) target bundleno = 540 (0x21c), region = 32  ;;  %s452_s9 = sshll.u32 (!%p157_p3), %s733_s5, 7 }
  0x30   : > { %s163_s10 = scalar_lea.sflag (!%p157_p3), [#allocation3], %s733_s5  ;;  %s166_s11 = scalar_lea.vmem (!%p157_p3), [#allocation2], %s452_s9 }
  0x34   : > { %587 = dma.done.wait (%p923_p6), %s163_s10, 2048  }
  0x35   : > { %589 = vsyncadd (%p923_p6), %s163_s10, 4294965248  ;;  %v743_v0 = vld [vmem:[%s166_s11] sm:$0xff]  ;;  %v745_v1 = vld [vmem:[%s166_s11 + $0x8] sm:$0xff]  ;;  %vm253_vm0 = vcmask 31744   ;;  %vm281_vm1 = vcmask 519168   ;;  %s832_s6 = scalar_lea.vmem [#allocation5], %s452_s9 }
  0x36   : > { %v747_v2 = vld [vmem:[%s166_s11 + $0x20] sm:$0xff]  ;;  %v205_v3 = vadd.f32 %v745_v1, %v743_v0  ;;  %v751_v4 = vld [vmem:[%s166_s11 + $0x28] sm:$0xff]  ;;  %v753_v5 = vld [vmem:[%s166_s11 + $0x10] sm:$0xff]  ;;  %s461_s9 = sshll.u32 %s657_s16, 11  ;;  %s372_s7 = sshll.u32 %s832_s6, 4  ;;  %s865_s7 = int_to_ptr.vmem [resolvable:$true] %s372_s7 }
  0x37   : > { %v755_v6 = vld [vmem:[%s166_s11 + $0x18] sm:$0xff]  ;;  %v211_v7 = vadd.f32 %v751_v4, %v747_v2  ;;  %v759_v8 = vld [vmem:[%s166_s11 + $0x30] sm:$0xff]  ;;  %v767_v12 = vld [vmem:[%s166_s11 + $0x40] sm:$0xff]  ;;  %s863_s19 = scalar_lea.hbm %s915_s3, %s461_s9  ;;  %s359_s16 = scalar_lea.sflag [#allocation4], %s733_s5 }
  0x38   : > { %v761_v9 = vld [vmem:[%s166_s11 + $0x38] sm:$0xff]  ;;  %206 = vadd.xlane.f32.xlu0 %v205_v3  ;;  %v208_v10 = vadd.f32 %v755_v6, %v753_v5  ;;  %v769_v13 = vld [vmem:[%s166_s11 + $0x48] sm:$0xff]  ;;  %v771_v14 = vld [vmem:[%s166_s11 + $0x50] sm:$0xff]  ;;  %s544_s20 = scalar_lea.vmem %s865_s7, 2048  ;;  %p924_p12 = scmp.ne.s32.totalorder %s920_s24, 0 }
  0x39   : > { %212 = vadd.xlane.f32.xlu1 %v211_v7  ;;  %v214_v11 = vadd.f32 %v761_v9, %v759_v8  ;;  %v773_v15 = vld [vmem:[%s166_s11 + $0x58] sm:$0xff]  ;;  %v217_v16 = vadd.f32 %v769_v13, %v767_v12  ;;  %v779_v18 = vld [vmem:[%s166_s11 + $0x60] sm:$0xff]  ;;  %v781_v19 = vld [vmem:[%s166_s11 + $0x68] sm:$0xff]  ;;  %p545_p11 = scmp.ne.s32.totalorder %s865_s7, %s544_s20  ;;  %s613_s22 = smov [#allocation5]  }
  0x3a   : > { %v220_v17 = vadd.f32 %v773_v15, %v771_v14  ;;  %v783_v20 = vld [vmem:[%s166_s11 + $0x70] sm:$0xff]  ;;  %v785_v21 = vld [vmem:[%s166_s11 + $0x78] sm:$0xff]  ;;  %v223_v22 = vadd.f32 %v781_v19, %v779_v18  ;;  %v237_v27 = vld [vmem:[%s913_s1] sm:$0xff]  ;;  %s548_s26 = sshll.u32 %s613_s22, 4  ;;  %s549_s26 = int_to_ptr.vmem [resolvable:$false] %s548_s26 }
  0x3b   : > { %v226_v23 = vadd.f32 %v785_v21, %v783_v20  ;;  %v239_v29 = vld [vmem:[%s913_s1 + $0x10] sm:$0xff]  ;;  %v238_v30 = vld [vmem:[%s913_s1 + $0x8] sm:$0xff]  ;;  %v240_v34 = vld [vmem:[%s913_s1 + $0x18] sm:$0xff]  ;;  %p546_p13 = pnand %p545_p11, %p924_p12  ;;  %s550_s27 = scalar_lea.vmem %s549_s26, 4096 }
  0x3c   : > { %209 = vadd.xlane.f32.xlu0 %v208_v10  ;;  %v241_v40 = vld [vmem:[%s913_s1 + $0x20] sm:$0xff]  ;;  %v242_v45 = vld [vmem:[%s913_s1 + $0x28] sm:$0xff]  ;;  %v243_v54 = vld [vmem:[%s913_s1 + $0x30] sm:$0xff]  ;;  %p551_p5 = scmp.lt.s32.totalorder %s865_s7, %s549_s26  ;;  %p552_p7 = scmp.lt.s32.totalorder %s550_s27, %s544_s20 }
  0x3d   : > { %215 = vadd.xlane.f32.xlu1 %v214_v11  ;;  %v244_v58 = vld [vmem:[%s913_s1 + $0x38] sm:$0xff]  ;;  %p547_p4 = pneg %p546_p13 }
  0x3e   : > { %p553_p8 = por %p552_p7, %p551_p5 }
  0x40   : > { %218 = vadd.xlane.f32.xlu0 %v217_v16  ;;  %p554_p10 = pnand %p553_p8, %p547_p4 }
  0x41   : > { %221 = vadd.xlane.f32.xlu1 %v220_v17 }
  0x44   : > { %224 = vadd.xlane.f32.xlu0 %v223_v22 }
  0x45   : > { %227 = vadd.xlane.f32.xlu1 %v226_v23 }
  0xc1   : > { %v207_v24 = vpop.xlane.xlu0 %206 }
  0xc2   : > { %v229_v25 = vmul.f32 0.00390625, %v207_v24  ;;  %v213_v26 = vpop.xlane.xlu1 %212 }
  0xc3   : > { %v231_v28 = vmul.f32 0.00390625, %v213_v26 }
  0xc4   : > { %v245_v32 = vmul.f32 %v237_v27, %v229_v25 }
  0xc5   : > { %v210_v31 = vpop.xlane.xlu0 %209  ;;  %v247_v37 = vmul.f32 %v239_v29, %v231_v28 }
  0xc6   : > { %v230_v33 = vmul.f32 0.00390625, %v210_v31  ;;  %v216_v35 = vpop.xlane.xlu1 %215  ;;  %v254_v42 = vsel %vm253_vm0, %v245_v32, 0.0 }
  0xc7   : > { %v232_v36 = vmul.f32 0.00390625, %v216_v35  ;;  %v257_v49 = vsel %vm253_vm0, %v247_v37, 0.0 }
  0xc8   : > { %v246_v38 = vmul.f32 %v238_v30, %v230_v33  ;;  %v279_v30 = vld [vmem:[%s914_s2] sm:$0xf] }
  0xc9   : > { %v248_v39 = vmul.f32 %v240_v34, %v232_v36  ;;  %v219_v41 = vpop.xlane.xlu0 %218 }
  0xca   : > { %v255_v43 = vsel %vm253_vm0, %v246_v38, 0.0  ;;  %v233_v44 = vmul.f32 0.00390625, %v219_v41  ;;  %v222_v46 = vpop.xlane.xlu1 %221 }
  0xcb   : > { %v256_v47 = vadd.f32 %v255_v43, %v254_v42  ;;  %v234_v48 = vmul.f32 0.00390625, %v222_v46  ;;  %v259_v50 = vsel %vm253_vm0, %v248_v39, 0.0 }
  0xcc   : > { %v249_v51 = vmul.f32 %v241_v40, %v233_v44 }
  0xcd   : > { %v258_v52 = vadd.f32 %v257_v49, %v256_v47  ;;  %v250_v53 = vmul.f32 %v242_v45, %v234_v48  ;;  %v225_v55 = vpop.xlane.xlu0 %224 }
  0xce   : > { %v261_v56 = vsel %vm253_vm0, %v249_v51, 0.0  ;;  %v235_v57 = vmul.f32 0.00390625, %v225_v55  ;;  %v228_v59 = vpop.xlane.xlu1 %227 }
  0xcf   : > { %v260_v60 = vadd.f32 %v259_v50, %v258_v52  ;;  %v236_v61 = vmul.f32 0.00390625, %v228_v59  ;;  %v263_v62 = vsel %vm253_vm0, %v250_v53, 0.0 }
  0xd0   : > { %v251_v63 = vmul.f32 %v243_v54, %v235_v57 }
  0xd1   : > { %v262_v3 = vadd.f32 %v261_v56, %v260_v60  ;;  %v252_v7 = vmul.f32 %v244_v58, %v236_v61 }
  0xd2   : > { %v265_v10 = vsel %vm253_vm0, %v251_v63, 0.0 }
  0xd3   : > { %v264_v11 = vadd.f32 %v263_v62, %v262_v3  ;;  %v267_v16 = vsel %vm253_vm0, %v252_v7, 0.0 }
  0xd5   : > { %v266_v17 = vadd.f32 %v265_v10, %v264_v11 }
  0xd7   : > { %v268_v22 = vadd.f32 %v267_v16, %v266_v17 }
  0xd9   : > { %v269_v23 = vrot.slane %v268_v22, 4 }
  0xdb   : > { %v270_v24 = vadd.f32 %v269_v23, %v268_v22 }
  0xdd   : > { %v271_v25 = vrot.slane %v270_v24, 2 }
  0xdf   : > { %v272_v26 = vadd.f32 %v271_v25, %v270_v24 }
  0xe1   : > { %v273_v27 = vrot.slane %v272_v26, 1 }
  0xe3   : > { %v274_v28 = vadd.f32 %v273_v27, %v272_v26 }
  0xe5   : > { %v275_v29 = vmax.f32 %v274_v28, 0.0 }
  0xe7   : > { %277 = vbcast.lane.b32.xlu0 %v275_v29, 256 }
 0x159   : > { %v278_v31 = vpop.permute.xlu0 %277 }
 0x15a   : > { %v280_v32 = vmul.f32 %v279_v30, %v278_v31 }
 0x15c   : > { %v282_v33 = vsel %vm281_vm1, %v280_v32, 0.0 }
 0x15d   : > { %v283_v34 = vrot.slane %v282_v33, 4 }
 0x15f   : > { %v284_v35 = vadd.f32 %v283_v34, %v282_v33 }
 0x161   : > { %v285_v36 = vrot.slane %v284_v35, 2 }
 0x163   : > { %v286_v37 = vadd.f32 %v285_v36, %v284_v35 }
 0x165   : > { %v287_v38 = vrot.slane %v286_v37, 1 }
 0x167   : > { %v288_v39 = vadd.f32 %v287_v38, %v286_v37 }
 0x169   : > { %v454_v40 = vmul.f32 -1.442695, %v288_v39 }
 0x16b   : > { %512 = vpow2.f32 %v454_v40 }
 0x178   : > { %v513_v41 = vpop.eup %512 }
 0x179   : > { %v292_v42 = vadd.f32 1.0, %v513_v41 }
 0x17b   : > { %514 = vrcp.f32 %v292_v42 }
 0x188   : > { %v515_v43 = vpop.eup %514 }
 0x189   : > { %308 = vbcast.lane.b32.xlu0 %v515_v43, 280  ;;  %296 = vbcast.lane.b32.xlu1 %v515_v43, 256 }
 0x18d   : > { %316 = vbcast.lane.b32.xlu0 %v515_v43, 296  ;;  %300 = vbcast.lane.b32.xlu1 %v515_v43, 264 }
 0x191   : > { %324 = vbcast.lane.b32.xlu0 %v515_v43, 312  ;;  %304 = vbcast.lane.b32.xlu1 %v515_v43, 272 }
 0x195   : > { %312 = vbcast.lane.b32.xlu1 %v515_v43, 288 }
 0x199   : > { %320 = vbcast.lane.b32.xlu1 %v515_v43, 304 }
 0x1fb   : > { %v309_v44 = vpop.permute.xlu0 %308  ;;  %v297_v45 = vpop.permute.xlu1 %296 }
 0x1fc   : > { %v332_v46 = vmul.f32 %v309_v44, %v759_v8  ;;  %v333_v47 = vmul.f32 %v309_v44, %v761_v9  ;;  %v326_v48 = vmul.f32 %v297_v45, %v743_v0  ;;  %v327_v49 = vmul.f32 %v297_v45, %v745_v1 }
 0x1fe   : > { %348 = vst [vmem:[%s832_s6 + $0x30] sm:$0xff] %v332_v46  ;;  %349 = vst [vmem:[%s832_s6 + $0x38] sm:$0xff] %v333_v47 }
 0x1ff   : > { %342 = vst [vmem:[%s832_s6] sm:$0xff] %v326_v48  ;;  %343 = vst [vmem:[%s832_s6 + $0x8] sm:$0xff] %v327_v49  ;;  %v317_v8 = vpop.permute.xlu0 %316  ;;  %v301_v0 = vpop.permute.xlu1 %300 }
 0x200   : > { %v336_v1 = vmul.f32 %v317_v8, %v771_v14  ;;  %v337_v9 = vmul.f32 %v317_v8, %v773_v15  ;;  %v328_v50 = vmul.f32 %v301_v0, %v753_v5  ;;  %v329_v51 = vmul.f32 %v301_v0, %v755_v6 }
 0x202   : > { %352 = vst [vmem:[%s832_s6 + $0x50] sm:$0xff] %v336_v1  ;;  %353 = vst [vmem:[%s832_s6 + $0x58] sm:$0xff] %v337_v9 }
 0x203   : > { %344 = vst [vmem:[%s832_s6 + $0x10] sm:$0xff] %v328_v50  ;;  %345 = vst [vmem:[%s832_s6 + $0x18] sm:$0xff] %v329_v51  ;;  %v325_v52 = vpop.permute.xlu0 %324  ;;  %v305_v53 = vpop.permute.xlu1 %304 }
 0x204   : > { %v340_v14 = vmul.f32 %v325_v52, %v783_v20  ;;  %v341_v54 = vmul.f32 %v325_v52, %v785_v21  ;;  %v330_v15 = vmul.f32 %v305_v53, %v747_v2  ;;  %v331_v5 = vmul.f32 %v305_v53, %v751_v4 }
 0x206   : > { %356 = vst [vmem:[%s832_s6 + $0x70] sm:$0xff] %v340_v14  ;;  %357 = vst [vmem:[%s832_s6 + $0x78] sm:$0xff] %v341_v54 }
 0x207   : > { %346 = vst [vmem:[%s832_s6 + $0x20] sm:$0xff] %v330_v15  ;;  %347 = vst [vmem:[%s832_s6 + $0x28] sm:$0xff] %v331_v5  ;;  %v313_v6 = vpop.permute.xlu1 %312 }
 0x208   : > { %v334_v55 = vmul.f32 %v313_v6, %v767_v12  ;;  %v335_v56 = vmul.f32 %v313_v6, %v769_v13 }
 0x20a   : > { %350 = vst [vmem:[%s832_s6 + $0x40] sm:$0xff] %v334_v55  ;;  %351 = vst [vmem:[%s832_s6 + $0x48] sm:$0xff] %v335_v56 }
 0x20b   : > { %v321_v2 = vpop.permute.xlu1 %320 }
 0x20c   : > { %v338_v4 = vmul.f32 %v321_v2, %v779_v18  ;;  %v339_v12 = vmul.f32 %v321_v2, %v781_v19 }
 0x20e   : > { %354 = vst [vmem:[%s832_s6 + $0x60] sm:$0xff] %v338_v4  ;;  %355 = vst [vmem:[%s832_s6 + $0x68] sm:$0xff] %v339_v12 }
 0x20f   : > { %557 = shalt.err (!%p554_p10)
}
 0x210   : > { %s558_s28 = scalar_lea.hbm %s863_s19, 2048  ;;  %s562_s10 = scalar_lea.hbm %s915_s3, 4096 }
 0x211   : > { %p559_p0 = scmp.ne.s32.totalorder %s863_s19, %s558_s28  ;;  %p563_p1 = scmp.lt.s32.totalorder %s863_s19, %s915_s3 }
 0x212   : > { %p564_p3 = scmp.lt.s32.totalorder %s562_s10, %s558_s28 }
 0x213   : > { %p560_p2 = pnand %p559_p0, %p924_p12 }
 0x214   : > { %p565_p6 = por %p564_p3, %p563_p1 }
 0x215   : > { %p561_p9 = pneg %p560_p2 }
 0x217   : > { %p566_p11 = pnand %p565_p6, %p561_p9 }
 0x219   : > { %569 = shalt.err (!%p566_p11)
}
 0x21a   : > { %s614_s4 = smov 256   ;;  %s615_s6 = smov 16  }
 0x21b   : > { %464 = dma.vmem_to_hbm [thread:$0]  (%p924_p12), %s865_s7, 2048, %s863_s19, %s359_s16, %s614_s4, %s614_s4, %s615_s6  }
 0x21c PF: > { %s387_s9 = sand.u32 1, %s596_s12   ;;  %p925_p13 = scmp.ne.s32.totalorder %s921_s25, 0 }
 0x21d   : > { %p926_p4 = scmp.ge.s32.totalorder %s608_s15, 2  ;;  %s388_s8 = scalar_lea.sflag [#allocation4], %s387_s9 }
 0x21f   : > { %p471_p5 = pnand %p926_p4, %p925_p13 }
 0x221   : > { %p472_p7 = pneg %p471_p5 }
 0x223   : > { %591 = dma.done.wait (%p472_p7), %s388_s8, 2048  }
 0x224   : > { %593 = vsyncadd (%p472_p7), %s388_s8, 4294965248  ;;  %p16_p8 = scmp.ge.s32.totalorder %s661_s18, 4   ;;  %s927_s12 = smov %s600_s13 }
 0x225   : > { %s928_s13 = smov %s604_s14  ;;  %s929_s14 = smov %s673_s21 }
 0x226   : > { %s930_s15 = smov %s661_s18  ;;  %18 = sbr.rel (!%p16_p8) target bundleno = 5 (0x5), region = 77 }
 0x22b   :  { %393 = vsyncpa [#allocation3], 1 }
 0x22c   :  { %395 = vsyncpa [#allocation3 + $0x1], 1 }
 0x22d   :  { %396 = vsyncpa [#allocation4], 1 }
 0x22e   :  { %398 = vsyncpa [#allocation4 + $0x1], 1 }

</bundles_post_ra>
